<compile_context>
chip_gen: v7x
topology: tpu7x:2x2x1
jax: 0.10.0
libtpu: 0.0.40
codegen_flags: <defaults>
</compile_context>

<pallas_src>
import functools

import jax
import jax.numpy as jnp
from jax import lax
from jax.experimental import pallas as pl
from jax.experimental.pallas import tpu as pltpu

_EPS = 1e-12  # matches torch.nn.functional.normalize default eps
_DN_LAST = (((1,), (1,)), ((), ()))  # contract last dims of both operands: A @ B.T


def _row_normalize(x):
    """x / max(||x||_2, eps) per row, via EUP rsqrt (no divide)."""
    ss = jnp.sum(x * x, axis=-1, keepdims=True)
    inv = jnp.minimum(lax.rsqrt(jnp.maximum(ss, 1e-30)), 1.0 / _EPS)
    return x * inv


def _sim_exp(a, b, inv_tau, mm_dtype):
    """exp(<a_i, b_j> * inv_tau) for all (i, j) without an explicit transpose."""
    s = lax.dot_general(a.astype(mm_dtype), b.astype(mm_dtype), _DN_LAST,
                        preferred_element_type=jnp.float32)
    return jnp.exp(s * inv_tau)


# ------------------------------ Pallas kernel --------------------------------

def _contrastive_kernel(it_ref, p1_ref, p2_ref, z1_ref, z2_ref, pc_ref,
                        out_ref, *, block_rows, mm_dtype):
    j = pl.program_id(0)
    inv_tau = it_ref[0]                                    # SMEM scalar (1/tau)

    # ----- instance path: row-chunk j of the N x N similarity matrices -------
    n1 = _row_normalize(p1_ref[...].astype(jnp.float32))   # [N, Dp]
    n2 = _row_normalize(p2_ref[...].astype(jnp.float32))   # [N, Dp]
    r0 = pl.multiple_of(j * block_rows, block_rows)
    q1 = _row_normalize(p1_ref[pl.ds(r0, block_rows), :].astype(jnp.float32))
    q2 = _row_normalize(p2_ref[pl.ds(r0, block_rows), :].astype(jnp.float32))

    refl1 = _sim_exp(q1, n1, inv_tau, mm_dtype)   # rows j of exp(sim(p1,p1)/tau)
    refl2 = _sim_exp(q2, n2, inv_tau, mm_dtype)   # rows j of exp(sim(p2,p2)/tau)
    betw1 = _sim_exp(q1, n2, inv_tau, mm_dtype)   # rows j of exp(sim(p1,p2)/tau)
    betw2 = _sim_exp(q2, n1, inv_tau, mm_dtype)   # rows j of exp(sim(p2,p1)/tau)

    # diagonals straight from the [TR, Dp] operands (no [N, N] masking).
    s_bd = jnp.sum(q1 * q2, axis=-1, keepdims=True) * inv_tau  # log(between diag)
    rd1 = jnp.exp(jnp.sum(q1 * q1, axis=-1, keepdims=True) * inv_tau)
    rd2 = jnp.exp(jnp.sum(q2 * q2, axis=-1, keepdims=True) * inv_tau)

    den1 = (jnp.sum(refl1, axis=-1, keepdims=True)
            + jnp.sum(betw1, axis=-1, keepdims=True) - rd1)
    den2 = (jnp.sum(refl2, axis=-1, keepdims=True)
            + jnp.sum(betw2, axis=-1, keepdims=True) - rd2)
    ins1 = jnp.sum(jnp.log(den1) - s_bd)          # direction 1 partial sum
    ins2 = jnp.sum(jnp.log(den2) - s_bd)          # direction 2 partial sum

    # lane-dense partial-sum tile for this row chunk (single unmasked store).
    out_ref[0] = jnp.concatenate(
        [jnp.full((1, 128), ins1, jnp.float32),
         jnp.full((1, 128), ins2, jnp.float32),
         jnp.zeros((6, 128), jnp.float32)], axis=0)

    # ----- text-contrast path (projections shared by both directions) --------
    @pl.when(j == 0)
    def _():
        z1 = z1_ref[...].astype(jnp.float32)      # [N, D]
        z2 = z2_ref[...].astype(jnp.float32)
        pc = pc_ref[...].astype(jnp.float32)      # [K, D]
        # matrix_i = (z_i @ pc.T).T == pc @ z_i.T -> [K, N]
        m1 = lax.dot_general(pc, z1, _DN_LAST, preferred_element_type=jnp.float32)
        m2 = lax.dot_general(pc, z2, _DN_LAST, preferred_element_type=jnp.float32)
        u1 = _row_normalize(m1)
        u2 = _row_normalize(m2)

        g11 = _sim_exp(u1, u1, inv_tau, mm_dtype)  # [K, K]
        g22 = _sim_exp(u2, u2, inv_tau, mm_dtype)
        g12 = _sim_exp(u1, u2, inv_tau, mm_dtype)
        g21 = _sim_exp(u2, u1, inv_tau, mm_dtype)

        ts_bd = jnp.sum(u1 * u2, axis=-1, keepdims=True) * inv_tau
        tbd = jnp.exp(ts_bd)
        trd1 = jnp.exp(jnp.sum(u1 * u1, axis=-1, keepdims=True) * inv_tau)
        trd2 = jnp.exp(jnp.sum(u2 * u2, axis=-1, keepdims=True) * inv_tau)

        tden1 = (jnp.sum(g11, axis=-1, keepdims=True)
                 + jnp.sum(g12, axis=-1, keepdims=True) - trd1 - tbd)
        tden2 = (jnp.sum(g22, axis=-1, keepdims=True)
                 + jnp.sum(g21, axis=-1, keepdims=True) - trd2 - tbd)
        txt1 = jnp.sum(jnp.log(tden1) - ts_bd)
        txt2 = jnp.sum(jnp.log(tden2) - ts_bd)
        out_ref[0, 2:4, :] = jnp.concatenate(
            [jnp.full((1, 128), txt1, jnp.float32),
             jnp.full((1, 128), txt2, jnp.float32)], axis=0)


# --------------------------------- wrapper -----------------------------------

def _pick_block_rows(n):
    """Largest row-chunk that divides n and keeps the four [TR, n] f32 exp
    tiles within a ~8 MiB budget (safe for the v7x 64 MiB / default-scoped
    VMEM limits)."""
    cap = max(8, (8 * 1024 * 1024) // (16 * n))
    for tr in (512, 256, 128, 64, 32, 16, 8):
        if tr <= cap and n % tr == 0:
            return tr
    return n  # fallback: single chunk


def contrastive_loss_forward(z1, z2, proj_z1, proj_z2, principal_component,
                             tau=0.5, use_bf16_matmul=False):
    """Mirrors ContrastiveLoss.forward (self_tp=False). Returns (ret, ins, txt)."""
    n = proj_z1.shape[0]
    k = principal_component.shape[0]
    tr = _pick_block_rows(n)
    nc = n // tr

    inv_tau = jnp.asarray([1.0 / tau], dtype=jnp.float32)
    mm_dtype = jnp.bfloat16 if use_bf16_matmul else jnp.float32

    kernel = functools.partial(_contrastive_kernel,
                               block_rows=tr, mm_dtype=mm_dtype)
    grid_spec = pltpu.PrefetchScalarGridSpec(
        num_scalar_prefetch=1,
        grid=(nc,),
        in_specs=[
            # Full arrays stay resident in VMEM (constant block index -> the
            # pipeline does not re-DMA them across grid steps).
            pl.BlockSpec(proj_z1.shape, lambda j, it: (0, 0)),
            pl.BlockSpec(proj_z2.shape, lambda j, it: (0, 0)),
            pl.BlockSpec(z1.shape, lambda j, it: (0, 0)),
            pl.BlockSpec(z2.shape, lambda j, it: (0, 0)),
            pl.BlockSpec(principal_component.shape, lambda j, it: (0, 0)),
        ],
        out_specs=pl.BlockSpec((1, 8, 128), lambda j, it: (j, 0, 0)),
    )
    partial = pl.pallas_call(
        kernel,
        grid_spec=grid_spec,
        out_shape=jax.ShapeDtypeStruct((nc, 8, 128), jnp.float32),
        compiler_params=pltpu.CompilerParams(
            dimension_semantics=("parallel",)),
    )(inv_tau, proj_z1, proj_z2, z1, z2, principal_component)

    sums = jnp.sum(partial[:, :4, 0], axis=0)   # [ins1, ins2, txt1, txt2] sums
    ins1 = sums[0] / n
    ins2 = sums[1] / n
    txt1 = sums[2] / k
    txt2 = sums[3] / k
    l1 = ins1 + txt1
    l2 = ins2 + txt2
    ret = (l1 + l2) * 0.5
    ins_loss = (ins1 + ins2) * 0.5
    contrast_loss = (txt1 + txt2) * 0.5
    return ret, ins_loss, contrast_loss


# ----------------------- pure-JAX reference (sanity check) -------------------

def _reference(z1, z2, p1, p2, pc, tau):
    def pair(a, b, sub_bd):
        a = _row_normalize(a.astype(jnp.float32))
        b = _row_normalize(b.astype(jnp.float32))
        refl = jnp.exp(a @ a.T / tau)
        betw = jnp.exp(a @ b.T / tau)
        den = refl.sum(1) + betw.sum(1) - jnp.diag(refl)
        if sub_bd:
            den = den - jnp.diag(betw)
        return -jnp.log(jnp.diag(betw) / den)

    def get_loss(za, zb, pa, pb):
        ins = pair(pa, pb, False).mean()
        m1 = (za @ pc.T).T
        m2 = (zb @ pc.T).T
        txt = pair(m1, m2, True).mean()
        return ins + txt, ins, txt

    l1, i1, c1 = get_loss(z1, z2, p1, p2)
    l2, i2, c2 = get_loss(z2, z1, p2, p1)
    return (l1 + l2) * 0.5, (i1 + i2) * 0.5, (c1 + c2) * 0.5


if __name__ == "__main__":
    key = jax.random.PRNGKey(0)
    k1, k2, k3, k4, k5 = jax.random.split(key, 5)

    N, D, Dp, K = 8, 32, 32, 8   # nodes, embed dim, proj dim, #principal comps
    tau = 0.5

    z1 = jax.random.normal(k1, (N, D), dtype=jnp.float32)
    z2 = jax.random.normal(k2, (N, D), dtype=jnp.float32)
    proj_z1 = jax.random.normal(k3, (N, Dp), dtype=jnp.float32)
    proj_z2 = jax.random.normal(k4, (N, Dp), dtype=jnp.float32)
    principal_component = jax.random.normal(k5, (K, D), dtype=jnp.float32)

    ret, ins_loss, contrast_loss = jax.block_until_ready(
        contrastive_loss_forward(z1, z2, proj_z1, proj_z2,
                                 principal_component, tau))

    ref_ret, ref_ins, ref_txt = _reference(z1, z2, proj_z1, proj_z2,
                                           principal_component, tau)
    assert jnp.allclose(ret, ref_ret, rtol=1e-4, atol=1e-4)
    assert jnp.allclose(ins_loss, ref_ins, rtol=1e-4, atol=1e-4)
    assert jnp.allclose(contrast_loss, ref_txt, rtol=1e-4, atol=1e-4)

    print("KERNEL_OK")
</pallas_src>

<mosaic_0001>
module attributes {stable_mosaic.version = 11 : i64} {
  func.func @_contrastive_kernel(%arg0: i32, %arg1: memref<1xf32, #tpu.memory_space<smem>>, %arg2: memref<8x32xf32, #tpu.memory_space<vmem>>, %arg3: memref<8x32xf32, #tpu.memory_space<vmem>>, %arg4: memref<8x32xf32, #tpu.memory_space<vmem>>, %arg5: memref<8x32xf32, #tpu.memory_space<vmem>>, %arg6: memref<8x32xf32, #tpu.memory_space<vmem>>, %arg7: memref<1x8x128xf32, #tpu.memory_space<vmem>>) attributes {dimension_semantics = [#tpu.dimension_semantics<parallel>], iteration_bounds = array<i64: 1>, scalar_prefetch = 1 : i64, scratch_operands = 0 : i64, tpu.core_type = #tpu.core_type<tc>, window_params = [{pipeline_mode = #tpu.pipeline_mode<synchronous>, transform_indices = @transform_0, window_bounds = array<i64: 8, 32>}, {pipeline_mode = #tpu.pipeline_mode<synchronous>, transform_indices = @transform_1, window_bounds = array<i64: 8, 32>}, {pipeline_mode = #tpu.pipeline_mode<synchronous>, transform_indices = @transform_2, window_bounds = array<i64: 8, 32>}, {pipeline_mode = #tpu.pipeline_mode<synchronous>, transform_indices = @transform_3, window_bounds = array<i64: 8, 32>}, {pipeline_mode = #tpu.pipeline_mode<synchronous>, transform_indices = @transform_4, window_bounds = array<i64: 8, 32>}, {transform_indices = @transform_5, window_bounds = array<i64: 1, 8, 128>}]} {
    %c0 = arith.constant 0 : index
    %0 = memref.load %arg1[%c0] : memref<1xf32, #tpu.memory_space<smem>>
    %c0_0 = arith.constant 0 : index
    %c0_1 = arith.constant 0 : index
    %1 = vector.load %arg2[%c0_0, %c0_1] : memref<8x32xf32, #tpu.memory_space<vmem>>, vector<8x32xf32>
    %2 = arith.mulf %1, %1 : vector<8x32xf32>
    %cst = arith.constant dense<0.000000e+00> : vector<8xf32>
    %3 = vector.multi_reduction <add>, %2, %cst [1] : vector<8x32xf32> to vector<8xf32>
    %4 = vector.shape_cast %3 : vector<8xf32> to vector<8x1xf32>
    %cst_2 = arith.constant 1.000000e-30 : f32
    %5 = vector.broadcast %cst_2 : f32 to vector<8x1xf32>
    %6 = arith.maximumf %4, %5 : vector<8x1xf32>
    %7 = math.rsqrt %6 : vector<8x1xf32>
    %cst_3 = arith.constant 9.99999995E+11 : f32
    %8 = vector.broadcast %cst_3 : f32 to vector<8x1xf32>
    %9 = arith.minimumf %7, %8 : vector<8x1xf32>
    %10 = vector.broadcast %9 : vector<8x1xf32> to vector<8x32xf32>
    %11 = arith.mulf %1, %10 : vector<8x32xf32>
    %c0_4 = arith.constant 0 : index
    %c0_5 = arith.constant 0 : index
    %12 = vector.load %arg3[%c0_4, %c0_5] : memref<8x32xf32, #tpu.memory_space<vmem>>, vector<8x32xf32>
    %13 = arith.mulf %12, %12 : vector<8x32xf32>
    %cst_6 = arith.constant dense<0.000000e+00> : vector<8xf32>
    %14 = vector.multi_reduction <add>, %13, %cst_6 [1] : vector<8x32xf32> to vector<8xf32>
    %15 = vector.shape_cast %14 : vector<8xf32> to vector<8x1xf32>
    %cst_7 = arith.constant 1.000000e-30 : f32
    %16 = vector.broadcast %cst_7 : f32 to vector<8x1xf32>
    %17 = arith.maximumf %15, %16 : vector<8x1xf32>
    %18 = math.rsqrt %17 : vector<8x1xf32>
    %cst_8 = arith.constant 9.99999995E+11 : f32
    %19 = vector.broadcast %cst_8 : f32 to vector<8x1xf32>
    %20 = arith.minimumf %18, %19 : vector<8x1xf32>
    %21 = vector.broadcast %20 : vector<8x1xf32> to vector<8x32xf32>
    %22 = arith.mulf %12, %21 : vector<8x32xf32>
    %c8_i32 = arith.constant 8 : i32
    %23 = arith.muli %arg0, %c8_i32 : i32
    %24 = tpu.assume_multiple %23, 8 : i32
    %25 = arith.index_cast %24 : i32 to index
    %c0_9 = arith.constant 0 : index
    %26 = vector.load %arg2[%25, %c0_9] : memref<8x32xf32, #tpu.memory_space<vmem>>, vector<8x32xf32>
    %27 = arith.mulf %26, %26 : vector<8x32xf32>
    %cst_10 = arith.constant dense<0.000000e+00> : vector<8xf32>
    %28 = vector.multi_reduction <add>, %27, %cst_10 [1] : vector<8x32xf32> to vector<8xf32>
    %29 = vector.shape_cast %28 : vector<8xf32> to vector<8x1xf32>
    %cst_11 = arith.constant 1.000000e-30 : f32
    %30 = vector.broadcast %cst_11 : f32 to vector<8x1xf32>
    %31 = arith.maximumf %29, %30 : vector<8x1xf32>
    %32 = math.rsqrt %31 : vector<8x1xf32>
    %cst_12 = arith.constant 9.99999995E+11 : f32
    %33 = vector.broadcast %cst_12 : f32 to vector<8x1xf32>
    %34 = arith.minimumf %32, %33 : vector<8x1xf32>
    %35 = vector.broadcast %34 : vector<8x1xf32> to vector<8x32xf32>
    %36 = arith.mulf %26, %35 : vector<8x32xf32>
    %37 = arith.index_cast %24 : i32 to index
    %c0_13 = arith.constant 0 : index
    %38 = vector.load %arg3[%37, %c0_13] : memref<8x32xf32, #tpu.memory_space<vmem>>, vector<8x32xf32>
    %39 = arith.mulf %38, %38 : vector<8x32xf32>
    %cst_14 = arith.constant dense<0.000000e+00> : vector<8xf32>
    %40 = vector.multi_reduction <add>, %39, %cst_14 [1] : vector<8x32xf32> to vector<8xf32>
    %41 = vector.shape_cast %40 : vector<8xf32> to vector<8x1xf32>
    %cst_15 = arith.constant 1.000000e-30 : f32
    %42 = vector.broadcast %cst_15 : f32 to vector<8x1xf32>
    %43 = arith.maximumf %41, %42 : vector<8x1xf32>
    %44 = math.rsqrt %43 : vector<8x1xf32>
    %cst_16 = arith.constant 9.99999995E+11 : f32
    %45 = vector.broadcast %cst_16 : f32 to vector<8x1xf32>
    %46 = arith.minimumf %44, %45 : vector<8x1xf32>
    %47 = vector.broadcast %46 : vector<8x1xf32> to vector<8x32xf32>
    %48 = arith.mulf %38, %47 : vector<8x32xf32>
    %cst_17 = arith.constant dense<0.000000e+00> : vector<8x8xf32>
    %49 = tpu.matmul %36, %11, %cst_17 {dimension_numbers = #tpu.dot_dimension_numbers<[1], [1], [0], [0], [0, 0, 1, 0], [], []>} : vector<8x32xf32>, vector<8x32xf32>, vector<8x8xf32> -> vector<8x8xf32>
    %50 = vector.broadcast %0 : f32 to vector<8x8xf32>
    %51 = arith.mulf %49, %50 : vector<8x8xf32>
    %52 = math.exp %51 : vector<8x8xf32>
    %cst_18 = arith.constant dense<0.000000e+00> : vector<8x8xf32>
    %53 = tpu.matmul %48, %22, %cst_18 {dimension_numbers = #tpu.dot_dimension_numbers<[1], [1], [0], [0], [0, 0, 1, 0], [], []>} : vector<8x32xf32>, vector<8x32xf32>, vector<8x8xf32> -> vector<8x8xf32>
    %54 = vector.broadcast %0 : f32 to vector<8x8xf32>
    %55 = arith.mulf %53, %54 : vector<8x8xf32>
    %56 = math.exp %55 : vector<8x8xf32>
    %cst_19 = arith.constant dense<0.000000e+00> : vector<8x8xf32>
    %57 = tpu.matmul %36, %22, %cst_19 {dimension_numbers = #tpu.dot_dimension_numbers<[1], [1], [0], [0], [0, 0, 1, 0], [], []>} : vector<8x32xf32>, vector<8x32xf32>, vector<8x8xf32> -> vector<8x8xf32>
    %58 = vector.broadcast %0 : f32 to vector<8x8xf32>
    %59 = arith.mulf %57, %58 : vector<8x8xf32>
    %60 = math.exp %59 : vector<8x8xf32>
    %cst_20 = arith.constant dense<0.000000e+00> : vector<8x8xf32>
    %61 = tpu.matmul %48, %11, %cst_20 {dimension_numbers = #tpu.dot_dimension_numbers<[1], [1], [0], [0], [0, 0, 1, 0], [], []>} : vector<8x32xf32>, vector<8x32xf32>, vector<8x8xf32> -> vector<8x8xf32>
    %62 = vector.broadcast %0 : f32 to vector<8x8xf32>
    %63 = arith.mulf %61, %62 : vector<8x8xf32>
    %64 = math.exp %63 : vector<8x8xf32>
    %65 = arith.mulf %36, %48 : vector<8x32xf32>
    %cst_21 = arith.constant dense<0.000000e+00> : vector<8xf32>
    %66 = vector.multi_reduction <add>, %65, %cst_21 [1] : vector<8x32xf32> to vector<8xf32>
    %67 = vector.shape_cast %66 : vector<8xf32> to vector<8x1xf32>
    %68 = vector.broadcast %0 : f32 to vector<8x1xf32>
    %69 = arith.mulf %67, %68 : vector<8x1xf32>
    %70 = arith.mulf %36, %36 : vector<8x32xf32>
    %cst_22 = arith.constant dense<0.000000e+00> : vector<8xf32>
    %71 = vector.multi_reduction <add>, %70, %cst_22 [1] : vector<8x32xf32> to vector<8xf32>
    %72 = vector.shape_cast %71 : vector<8xf32> to vector<8x1xf32>
    %73 = vector.broadcast %0 : f32 to vector<8x1xf32>
    %74 = arith.mulf %72, %73 : vector<8x1xf32>
    %75 = math.exp %74 : vector<8x1xf32>
    %76 = arith.mulf %48, %48 : vector<8x32xf32>
    %cst_23 = arith.constant dense<0.000000e+00> : vector<8xf32>
    %77 = vector.multi_reduction <add>, %76, %cst_23 [1] : vector<8x32xf32> to vector<8xf32>
    %78 = vector.shape_cast %77 : vector<8xf32> to vector<8x1xf32>
    %79 = vector.broadcast %0 : f32 to vector<8x1xf32>
    %80 = arith.mulf %78, %79 : vector<8x1xf32>
    %81 = math.exp %80 : vector<8x1xf32>
    %cst_24 = arith.constant dense<0.000000e+00> : vector<8xf32>
    %82 = vector.multi_reduction <add>, %52, %cst_24 [1] : vector<8x8xf32> to vector<8xf32>
    %83 = vector.shape_cast %82 : vector<8xf32> to vector<8x1xf32>
    %cst_25 = arith.constant dense<0.000000e+00> : vector<8xf32>
    %84 = vector.multi_reduction <add>, %60, %cst_25 [1] : vector<8x8xf32> to vector<8xf32>
    %85 = vector.shape_cast %84 : vector<8xf32> to vector<8x1xf32>
    %86 = arith.addf %83, %85 : vector<8x1xf32>
    %87 = arith.subf %86, %75 : vector<8x1xf32>
    %cst_26 = arith.constant dense<0.000000e+00> : vector<8xf32>
    %88 = vector.multi_reduction <add>, %56, %cst_26 [1] : vector<8x8xf32> to vector<8xf32>
    %89 = vector.shape_cast %88 : vector<8xf32> to vector<8x1xf32>
    %cst_27 = arith.constant dense<0.000000e+00> : vector<8xf32>
    %90 = vector.multi_reduction <add>, %64, %cst_27 [1] : vector<8x8xf32> to vector<8xf32>
    %91 = vector.shape_cast %90 : vector<8xf32> to vector<8x1xf32>
    %92 = arith.addf %89, %91 : vector<8x1xf32>
    %93 = arith.subf %92, %81 : vector<8x1xf32>
    %94 = math.log %87 : vector<8x1xf32>
    %95 = arith.subf %94, %69 : vector<8x1xf32>
    %96 = vector.shape_cast %95 : vector<8x1xf32> to vector<1x8x1xf32>
    %cst_28 = arith.constant dense<0.000000e+00> : vector<1xf32>
    %97 = vector.multi_reduction <add>, %96, %cst_28 [1, 2] : vector<1x8x1xf32> to vector<1xf32>
    %98 = vector.shape_cast %97 : vector<1xf32> to vector<1x1x1xf32>
    %99 = vector.extract %98[0, 0, 0] : f32 from vector<1x1x1xf32>
    %100 = math.log %93 : vector<8x1xf32>
    %101 = arith.subf %100, %69 : vector<8x1xf32>
    %102 = vector.shape_cast %101 : vector<8x1xf32> to vector<1x8x1xf32>
    %cst_29 = arith.constant dense<0.000000e+00> : vector<1xf32>
    %103 = vector.multi_reduction <add>, %102, %cst_29 [1, 2] : vector<1x8x1xf32> to vector<1xf32>
    %104 = vector.shape_cast %103 : vector<1xf32> to vector<1x1x1xf32>
    %105 = vector.extract %104[0, 0, 0] : f32 from vector<1x1x1xf32>
    %106 = vector.broadcast %99 : f32 to vector<1x128xf32>
    %107 = vector.broadcast %105 : f32 to vector<1x128xf32>
    %cst_30 = arith.constant 0.000000e+00 : f32
    %108 = vector.broadcast %cst_30 : f32 to vector<6x128xf32>
    %109 = tpu.concatenate %106, %107, %108 in 0 : vector<1x128xf32>, vector<1x128xf32>, vector<6x128xf32> -> vector<8x128xf32>
    %c0_31 = arith.constant 0 : index
    %c0_32 = arith.constant 0 : index
    %c0_33 = arith.constant 0 : index
    %110 = vector.load %arg7[%c0_31, %c0_32, %c0_33] : memref<1x8x128xf32, #tpu.memory_space<vmem>>, vector<1x8x128xf32>
    %111 = vector.shape_cast %110 : vector<1x8x128xf32> to vector<8x128xf32>
    %112 = vector.shape_cast %109 : vector<8x128xf32> to vector<1x8x128xf32>
    tpu.vector_store %arg7[%c0_31, %c0_32, %c0_33], %112 {strides = array<i32>} : memref<1x8x128xf32, #tpu.memory_space<vmem>>, vector<1x8x128xf32>,
    %c0_i32 = arith.constant 0 : i32
    %113 = arith.cmpi eq, %arg0, %c0_i32 : i32
    %114 = arith.extui %113 : i1 to i32
    %c0_i32_34 = arith.constant 0 : i32
    %115 = arith.cmpi ne, %114, %c0_i32_34 : i32
    scf.if %115 {
      %c0_35 = arith.constant 0 : index
      %c0_36 = arith.constant 0 : index
      %116 = vector.load %arg4[%c0_35, %c0_36] : memref<8x32xf32, #tpu.memory_space<vmem>>, vector<8x32xf32>
      %c0_37 = arith.constant 0 : index
      %c0_38 = arith.constant 0 : index
      %117 = vector.load %arg5[%c0_37, %c0_38] : memref<8x32xf32, #tpu.memory_space<vmem>>, vector<8x32xf32>
      %c0_39 = arith.constant 0 : index
      %c0_40 = arith.constant 0 : index
      %118 = vector.load %arg6[%c0_39, %c0_40] : memref<8x32xf32, #tpu.memory_space<vmem>>, vector<8x32xf32>
      %cst_41 = arith.constant dense<0.000000e+00> : vector<8x8xf32>
      %119 = tpu.matmul %118, %116, %cst_41 {dimension_numbers = #tpu.dot_dimension_numbers<[1], [1], [0], [0], [0, 0, 1, 0], [], []>} : vector<8x32xf32>, vector<8x32xf32>, vector<8x8xf32> -> vector<8x8xf32>
      %cst_42 = arith.constant dense<0.000000e+00> : vector<8x8xf32>
      %120 = tpu.matmul %118, %117, %cst_42 {dimension_numbers = #tpu.dot_dimension_numbers<[1], [1], [0], [0], [0, 0, 1, 0], [], []>} : vector<8x32xf32>, vector<8x32xf32>, vector<8x8xf32> -> vector<8x8xf32>
      %121 = arith.mulf %119, %119 : vector<8x8xf32>
      %cst_43 = arith.constant dense<0.000000e+00> : vector<8xf32>
      %122 = vector.multi_reduction <add>, %121, %cst_43 [1] : vector<8x8xf32> to vector<8xf32>
      %123 = vector.shape_cast %122 : vector<8xf32> to vector<8x1xf32>
      %cst_44 = arith.constant 1.000000e-30 : f32
      %124 = vector.broadcast %cst_44 : f32 to vector<8x1xf32>
      %125 = arith.maximumf %123, %124 : vector<8x1xf32>
      %126 = math.rsqrt %125 : vector<8x1xf32>
      %cst_45 = arith.constant 9.99999995E+11 : f32
      %127 = vector.broadcast %cst_45 : f32 to vector<8x1xf32>
      %128 = arith.minimumf %126, %127 : vector<8x1xf32>
      %129 = vector.broadcast %128 : vector<8x1xf32> to vector<8x8xf32>
      %130 = arith.mulf %119, %129 : vector<8x8xf32>
      %131 = arith.mulf %120, %120 : vector<8x8xf32>
      %cst_46 = arith.constant dense<0.000000e+00> : vector<8xf32>
      %132 = vector.multi_reduction <add>, %131, %cst_46 [1] : vector<8x8xf32> to vector<8xf32>
      %133 = vector.shape_cast %132 : vector<8xf32> to vector<8x1xf32>
      %cst_47 = arith.constant 1.000000e-30 : f32
      %134 = vector.broadcast %cst_47 : f32 to vector<8x1xf32>
      %135 = arith.maximumf %133, %134 : vector<8x1xf32>
      %136 = math.rsqrt %135 : vector<8x1xf32>
      %cst_48 = arith.constant 9.99999995E+11 : f32
      %137 = vector.broadcast %cst_48 : f32 to vector<8x1xf32>
      %138 = arith.minimumf %136, %137 : vector<8x1xf32>
      %139 = vector.broadcast %138 : vector<8x1xf32> to vector<8x8xf32>
      %140 = arith.mulf %120, %139 : vector<8x8xf32>
      %cst_49 = arith.constant dense<0.000000e+00> : vector<8x8xf32>
      %141 = tpu.matmul %130, %130, %cst_49 {dimension_numbers = #tpu.dot_dimension_numbers<[1], [1], [0], [0], [0, 0, 1, 0], [], []>} : vector<8x8xf32>, vector<8x8xf32>, vector<8x8xf32> -> vector<8x8xf32>
      %142 = vector.broadcast %0 : f32 to vector<8x8xf32>
      %143 = arith.mulf %141, %142 : vector<8x8xf32>
      %144 = math.exp %143 : vector<8x8xf32>
      %cst_50 = arith.constant dense<0.000000e+00> : vector<8x8xf32>
      %145 = tpu.matmul %140, %140, %cst_50 {dimension_numbers = #tpu.dot_dimension_numbers<[1], [1], [0], [0], [0, 0, 1, 0], [], []>} : vector<8x8xf32>, vector<8x8xf32>, vector<8x8xf32> -> vector<8x8xf32>
      %146 = vector.broadcast %0 : f32 to vector<8x8xf32>
      %147 = arith.mulf %145, %146 : vector<8x8xf32>
      %148 = math.exp %147 : vector<8x8xf32>
      %cst_51 = arith.constant dense<0.000000e+00> : vector<8x8xf32>
      %149 = tpu.matmul %130, %140, %cst_51 {dimension_numbers = #tpu.dot_dimension_numbers<[1], [1], [0], [0], [0, 0, 1, 0], [], []>} : vector<8x8xf32>, vector<8x8xf32>, vector<8x8xf32> -> vector<8x8xf32>
      %150 = vector.broadcast %0 : f32 to vector<8x8xf32>
      %151 = arith.mulf %149, %150 : vector<8x8xf32>
      %152 = math.exp %151 : vector<8x8xf32>
      %cst_52 = arith.constant dense<0.000000e+00> : vector<8x8xf32>
      %153 = tpu.matmul %140, %130, %cst_52 {dimension_numbers = #tpu.dot_dimension_numbers<[1], [1], [0], [0], [0, 0, 1, 0], [], []>} : vector<8x8xf32>, vector<8x8xf32>, vector<8x8xf32> -> vector<8x8xf32>
      %154 = vector.broadcast %0 : f32 to vector<8x8xf32>
      %155 = arith.mulf %153, %154 : vector<8x8xf32>
      %156 = math.exp %155 : vector<8x8xf32>
      %157 = arith.mulf %130, %140 : vector<8x8xf32>
      %cst_53 = arith.constant dense<0.000000e+00> : vector<8xf32>
      %158 = vector.multi_reduction <add>, %157, %cst_53 [1] : vector<8x8xf32> to vector<8xf32>
      %159 = vector.shape_cast %158 : vector<8xf32> to vector<8x1xf32>
      %160 = vector.broadcast %0 : f32 to vector<8x1xf32>
      %161 = arith.mulf %159, %160 : vector<8x1xf32>
      %162 = math.exp %161 : vector<8x1xf32>
      %163 = arith.mulf %130, %130 : vector<8x8xf32>
      %cst_54 = arith.constant dense<0.000000e+00> : vector<8xf32>
      %164 = vector.multi_reduction <add>, %163, %cst_54 [1] : vector<8x8xf32> to vector<8xf32>
      %165 = vector.shape_cast %164 : vector<8xf32> to vector<8x1xf32>
      %166 = vector.broadcast %0 : f32 to vector<8x1xf32>
      %167 = arith.mulf %165, %166 : vector<8x1xf32>
      %168 = math.exp %167 : vector<8x1xf32>
      %169 = arith.mulf %140, %140 : vector<8x8xf32>
      %cst_55 = arith.constant dense<0.000000e+00> : vector<8xf32>
      %170 = vector.multi_reduction <add>, %169, %cst_55 [1] : vector<8x8xf32> to vector<8xf32>
      %171 = vector.shape_cast %170 : vector<8xf32> to vector<8x1xf32>
      %172 = vector.broadcast %0 : f32 to vector<8x1xf32>
      %173 = arith.mulf %171, %172 : vector<8x1xf32>
      %174 = math.exp %173 : vector<8x1xf32>
      %cst_56 = arith.constant dense<0.000000e+00> : vector<8xf32>
      %175 = vector.multi_reduction <add>, %144, %cst_56 [1] : vector<8x8xf32> to vector<8xf32>
      %176 = vector.shape_cast %175 : vector<8xf32> to vector<8x1xf32>
      %cst_57 = arith.constant dense<0.000000e+00> : vector<8xf32>
      %177 = vector.multi_reduction <add>, %152, %cst_57 [1] : vector<8x8xf32> to vector<8xf32>
      %178 = vector.shape_cast %177 : vector<8xf32> to vector<8x1xf32>
      %179 = arith.addf %176, %178 : vector<8x1xf32>
      %180 = arith.subf %179, %168 : vector<8x1xf32>
      %181 = arith.subf %180, %162 : vector<8x1xf32>
      %cst_58 = arith.constant dense<0.000000e+00> : vector<8xf32>
      %182 = vector.multi_reduction <add>, %148, %cst_58 [1] : vector<8x8xf32> to vector<8xf32>
      %183 = vector.shape_cast %182 : vector<8xf32> to vector<8x1xf32>
      %cst_59 = arith.constant dense<0.000000e+00> : vector<8xf32>
      %184 = vector.multi_reduction <add>, %156, %cst_59 [1] : vector<8x8xf32> to vector<8xf32>
      %185 = vector.shape_cast %184 : vector<8xf32> to vector<8x1xf32>
      %186 = arith.addf %183, %185 : vector<8x1xf32>
      %187 = arith.subf %186, %174 : vector<8x1xf32>
      %188 = arith.subf %187, %162 : vector<8x1xf32>
      %189 = math.log %181 : vector<8x1xf32>
      %190 = arith.subf %189, %161 : vector<8x1xf32>
      %191 = vector.shape_cast %190 : vector<8x1xf32> to vector<1x8x1xf32>
      %cst_60 = arith.constant dense<0.000000e+00> : vector<1xf32>
      %192 = vector.multi_reduction <add>, %191, %cst_60 [1, 2] : vector<1x8x1xf32> to vector<1xf32>
      %193 = vector.shape_cast %192 : vector<1xf32> to vector<1x1x1xf32>
      %194 = vector.extract %193[0, 0, 0] : f32 from vector<1x1x1xf32>
      %195 = math.log %188 : vector<8x1xf32>
      %196 = arith.subf %195, %161 : vector<8x1xf32>
      %197 = vector.shape_cast %196 : vector<8x1xf32> to vector<1x8x1xf32>
      %cst_61 = arith.constant dense<0.000000e+00> : vector<1xf32>
      %198 = vector.multi_reduction <add>, %197, %cst_61 [1, 2] : vector<1x8x1xf32> to vector<1xf32>
      %199 = vector.shape_cast %198 : vector<1xf32> to vector<1x1x1xf32>
      %200 = vector.extract %199[0, 0, 0] : f32 from vector<1x1x1xf32>
      %201 = vector.broadcast %194 : f32 to vector<1x128xf32>
      %202 = vector.broadcast %200 : f32 to vector<1x128xf32>
      %203 = tpu.concatenate %201, %202 in 0 : vector<1x128xf32>, vector<1x128xf32> -> vector<2x128xf32>
      %c0_62 = arith.constant 0 : index
      %c2 = arith.constant 2 : index
      %c0_63 = arith.constant 0 : index
      %204 = vector.load %arg7[%c0_62, %c2, %c0_63] : memref<1x8x128xf32, #tpu.memory_space<vmem>>, vector<1x2x128xf32>
      %205 = vector.shape_cast %204 : vector<1x2x128xf32> to vector<2x128xf32>
      %206 = vector.shape_cast %203 : vector<2x128xf32> to vector<1x2x128xf32>
      tpu.vector_store %arg7[%c0_62, %c2, %c0_63], %206 {strides = array<i32>} : memref<1x8x128xf32, #tpu.memory_space<vmem>>, vector<1x2x128xf32>,
    } else {
    }
    return
  }
  func.func @transform_0(%arg0: i32, %arg1: memref<1xf32, #tpu.memory_space<smem>>) -> (i32, i32) {
    %c0_i32 = arith.constant 0 : i32
    %c0_i32_0 = arith.constant 0 : i32
    %c0_i32_1 = arith.constant 0 : i32
    return %c0_i32, %c0_i32_0 : i32, i32
  }
  func.func @transform_1(%arg0: i32, %arg1: memref<1xf32, #tpu.memory_space<smem>>) -> (i32, i32) {
    %c0_i32 = arith.constant 0 : i32
    %c0_i32_0 = arith.constant 0 : i32
    %c0_i32_1 = arith.constant 0 : i32
    return %c0_i32, %c0_i32_0 : i32, i32
  }
  func.func @transform_2(%arg0: i32, %arg1: memref<1xf32, #tpu.memory_space<smem>>) -> (i32, i32) {
    %c0_i32 = arith.constant 0 : i32
    %c0_i32_0 = arith.constant 0 : i32
    %c0_i32_1 = arith.constant 0 : i32
    return %c0_i32, %c0_i32_0 : i32, i32
  }
  func.func @transform_3(%arg0: i32, %arg1: memref<1xf32, #tpu.memory_space<smem>>) -> (i32, i32) {
    %c0_i32 = arith.constant 0 : i32
    %c0_i32_0 = arith.constant 0 : i32
    %c0_i32_1 = arith.constant 0 : i32
    return %c0_i32, %c0_i32_0 : i32, i32
  }
  func.func @transform_4(%arg0: i32, %arg1: memref<1xf32, #tpu.memory_space<smem>>) -> (i32, i32) {
    %c0_i32 = arith.constant 0 : i32
    %c0_i32_0 = arith.constant 0 : i32
    %c0_i32_1 = arith.constant 0 : i32
    return %c0_i32, %c0_i32_0 : i32, i32
  }
  func.func @transform_5(%arg0: i32, %arg1: memref<1xf32, #tpu.memory_space<smem>>) -> (i32, i32, i32) {
    %c0_i32 = arith.constant 0 : i32
    %c0_i32_0 = arith.constant 0 : i32
    %c0_i32_1 = arith.constant 0 : i32
    return %arg0, %c0_i32, %c0_i32_0 : i32, i32, i32
  }
}

</mosaic_0001>

<bundles_post_ra>
// kernel: tpu_custom_call.1
= control target key start
LH: loop header
LB: loop body
LE: loop exit
PB: predicated region body
PF: predicated region fallthrough
CT: control target
= control target key end

     0   :  { %12 = vsyncpa [#allocation5], 0  ;;  %s1462_s0 = inlined_call_operand.<no memory space> [shape: f32[1], index: 0, kind: input, shape index: {}]   ;;  %s1463_s1 = inlined_call_operand.hbm [shape: f32[8,32], index: 1, kind: input, shape index: {}]   ;;  %s1464_s2 = inlined_call_operand.hbm [shape: f32[8,32], index: 2, kind: input, shape index: {}]   ;;  %s1465_s3 = inlined_call_operand.vmem [shape: f32[8,32], index: 3, kind: input, shape index: {}]   ;;  %s1466_s4 = inlined_call_operand.hbm [shape: f32[8,32], index: 4, kind: input, shape index: {}]   ;;  %s1467_s5 = inlined_call_operand.vmem [shape: f32[8,32], index: 5, kind: input, shape index: {}]   ;;  %s1468_s6 = inlined_call_operand.hbm [shape: f32[1,8,128], index: 6, kind: output, shape index: {}]  }
   0x1   :  { %13 = vsyncpa [#allocation8], 0 }
   0x2   :  { %14 = vsyncpa [#allocation6], 0  ;;  %s1273_s21 = smov [#allocation7]   ;;  %s1274_s23 = smov [#allocation4]  }
   0x3   :  { %s31_s22 = sshll.u32 %s1273_s21, 4  ;;  %s21_s24 = sshll.u32 %s1274_s23, 4  ;;  %s32_s22 = int_to_ptr.vmem [resolvable:$true] %s31_s22  ;;  %s22_s24 = int_to_ptr.vmem [resolvable:$true] %s21_s24 }
   0x4   :  { %s1179_s27 = scalar_lea.hbm %s1464_s2, 128 }
   0x5   :  { %p1180_p0 = scmp.ne.s32.totalorder %s1464_s2, %s1179_s27  ;;  %p1183_p1 = scmp.lt.u32.totalorder %s1179_s27, %s1464_s2 }
   0x7   :  { %p1185_p2 = pnand %p1183_p1, %p1180_p0 }
   0x9   :  { %1188 = shalt.err (!%p1185_p2)
}
   0xa   :  { %s1189_s8 = scalar_lea.vmem %s32_s22, 128  ;;  %p1194_p4 = scmp.lt.s32.totalorder %s32_s22, %s32_s22 }
   0xb   :  { %p1190_p3 = scmp.ne.s32.totalorder %s32_s22, %s1189_s8  ;;  %p1195_p5 = scmp.lt.s32.totalorder %s1189_s8, %s1189_s8 }
   0xd   :  { %p1196_p6 = por %p1195_p5, %p1194_p4 }
   0xf   :  { %p1197_p7 = pnand %p1196_p6, %p1190_p3 }
  0x11   :  { %1200 = shalt.err (!%p1197_p7)
}
  0x12   :  { %34 = dma.hbm_to_vmem [thread:$0]  %s1464_s2, 128, %s32_s22, [#allocation8]  }
  0x13   :  { %s1201_s13 = scalar_lea.hbm %s1463_s1, 128 }
  0x14   :  { %p1202_p8 = scmp.ne.s32.totalorder %s1463_s1, %s1201_s13  ;;  %p1205_p9 = scmp.lt.u32.totalorder %s1201_s13, %s1463_s1 }
  0x16   :  { %p1207_p10 = pnand %p1205_p9, %p1202_p8 }
  0x18   :  { %1210 = shalt.err (!%p1207_p10)
}
  0x19   :  { %s1211_s18 = scalar_lea.vmem %s22_s24, 128  ;;  %p1216_p12 = scmp.lt.s32.totalorder %s22_s24, %s22_s24 }
  0x1a   :  { %p1212_p11 = scmp.ne.s32.totalorder %s22_s24, %s1211_s18  ;;  %p1217_p13 = scmp.lt.s32.totalorder %s1211_s18, %s1211_s18 }
  0x1c   :  { %p1218_p0 = por %p1217_p13, %p1216_p12 }
  0x1e   :  { %p1219_p1 = pnand %p1218_p0, %p1212_p11 }
  0x20   :  { %1222 = shalt.err (!%p1219_p1)
}
  0x21   :  { %24 = dma.hbm_to_vmem [thread:$0]  %s1463_s1, 128, %s22_s24, [#allocation5]  }
  0x22   :  { %s1275_s20 = smov [#allocation9]   ;;  %s1223_s25 = scalar_lea.hbm %s1466_s4, 128 }
  0x23   :  { %s43_s21 = sshll.u32 %s1275_s20, 4  ;;  %p1224_p2 = scmp.ne.s32.totalorder %s1466_s4, %s1223_s25  ;;  %s44_s21 = int_to_ptr.vmem [resolvable:$true] %s43_s21 }
  0x24   :  { %p1227_p3 = scmp.lt.u32.totalorder %s1223_s25, %s1466_s4 }
  0x26   :  { %p1229_p4 = pnand %p1227_p3, %p1224_p2 }
  0x28   :  { %1232 = shalt.err (!%p1229_p4)
}
  0x29   :  { %s1233_s30 = scalar_lea.vmem %s44_s21, 128  ;;  %p1238_p6 = scmp.lt.s32.totalorder %s44_s21, %s44_s21 }
  0x2a   :  { %p1234_p5 = scmp.ne.s32.totalorder %s44_s21, %s1233_s30  ;;  %p1239_p7 = scmp.lt.s32.totalorder %s1233_s30, %s1233_s30 }
  0x2c   :  { %p1240_p8 = por %p1239_p7, %p1238_p6 }
  0x2e   :  { %p1241_p9 = pnand %p1240_p8, %p1234_p5 }
  0x30   :  { %1244 = shalt.err (!%p1241_p9)
}
  0x31   :  { %46 = dma.hbm_to_vmem [thread:$0]  %s1466_s4, 128, %s44_s21, [#allocation8]  }
  0x32   :  { %1267 = dma.done.wait [#allocation5], 128  }
  0x33   :  { %1268 = vsyncadd [#allocation5], 4294967168 }
  0x34   :  { %1269 = dma.done.wait [#allocation8], 256  }
  0x35   :  { %1270 = vsyncadd [#allocation8], 4294967040  ;;  %vm61_vm0 = vcmask 261120   ;;  %v80_v0 = vld [vmem:[#allocation4] sm:$0xff]  ;;  %v90_v1 = vld [vmem:[#allocation7] sm:$0xff]  ;;  %v1276_v6 = vmov 0.0   ;;  %v1403_v53 = vstv %s1462_s0 }
  0x36   :  { %v81_v2 = vmul.f32 %v80_v0, %v80_v0  ;;  %v91_v3 = vmul.f32 %v90_v1, %v90_v1  ;;  %1069 = vmatprep.subr.mxu0 %v1276_v6  ;;  %1074 = vmatprep.subr.mxu1 %v1276_v6  ;;  %vm1277_vm1 = vmmov 0   ;;  %v478_v28 = vld [vmem:[%s1465_s3] sm:$0xff]  ;;  %v479_v30 = vld [vmem:[#allocation9] sm:$0xff]  ;;  %vm423_vm2 = vcmask 64512   ;;  %s1278_s12 = smov [#allocation10]  }
  0x37   :  { %1071 = vmatprep.mubr.msk.f32.mxu0 %vm1277_vm1, %v1276_v6  ;;  %1076 = vmatprep.mubr.msk.f32.mxu1 %vm1277_vm1, %v1276_v6  ;;  %v480_v29 = vld [vmem:[%s1467_s5] sm:$0xff]  ;;  %vm443_vm3 = vcmask 7168   ;;  %vm469_vm4 = vcmask 1040384   ;;  %vm471_vm5 = vcmask 1041408   ;;  %s1019_s13 = sshll.u32 %s1278_s12, 4  ;;  %s1020_s13 = int_to_ptr.vmem [resolvable:$true] %s1019_s13 }
  0x38   :  { %v82_v4 = vsel %vm61_vm0, %v81_v2, 0.0  ;;  %v92_v5 = vsel %vm61_vm0, %v91_v3, 0.0  ;;  %s1245_s15 = scalar_lea.vmem %s1020_s13, 128  ;;  %p1250_p11 = scmp.lt.s32.totalorder %s1020_s13, %s1020_s13 }
  0x39   :  { %83 = vadd.xlane.f32.xlu1 %v82_v4  ;;  %63 = vadd.xlane.f32.xlu0 %v82_v4  ;;  %p1246_p10 = scmp.ne.s32.totalorder %s1020_s13, %s1245_s15  ;;  %p1251_p12 = scmp.lt.s32.totalorder %s1245_s15, %s1245_s15 }
  0x3b   :  { %p1252_p13 = por %p1251_p12, %p1250_p11 }
  0x3d   :  { %93 = vadd.xlane.f32.xlu1 %v92_v5  ;;  %72 = vadd.xlane.f32.xlu0 %v92_v5  ;;  %p1253_p0 = pnand %p1252_p13, %p1246_p10 }
  0xc6   :  { %v84_v7 = vpop.xlane.xlu1 %83  ;;  %v64_v8 = vpop.xlane.xlu0 %63 }
  0xc7   :  { %v85_v9 = vmax.f32 %v84_v7, 1e-30  ;;  %v65_v10 = vmax.f32 %v64_v8, 1e-30 }
  0xc9   :  { %1133 = vrsqrt.f32 %v85_v9 }
  0xca   :  { %1135 = vrsqrt.f32 %v65_v10  ;;  %v94_v11 = vpop.xlane.xlu1 %93  ;;  %v73_v12 = vpop.xlane.xlu0 %72 }
  0xcb   :  { %v95_v13 = vmax.f32 %v94_v11, 1e-30  ;;  %v74_v14 = vmax.f32 %v73_v12, 1e-30 }
  0xcd   :  { %1137 = vrsqrt.f32 %v95_v13 }
  0xce   :  { %1139 = vrsqrt.f32 %v74_v14 }
  0xd3   :  { %v1134_v15 = vpop.eup %1133 }
  0xd4   :  { %v1136_v16 = vpop.eup %1135  ;;  %v87_v17 = vmin.f32 %v1134_v15, 1e+12 }
  0xd5   :  { %v67_v18 = vmin.f32 %v1136_v16, 1e+12 }
  0xd6   :  { %v88_v22 = vmul.f32 %v87_v17, %v80_v0 }
  0xd7   :  { %v1138_v19 = vpop.eup %1137  ;;  %v68_v20 = vmul.f32 %v80_v0, %v67_v18 }
  0xd8   :  { %v1140_v21 = vpop.eup %1139  ;;  %v97_v23 = vmin.f32 %v1138_v19, 1e+12  ;;  %v409_v43 = vmul.f32 %v88_v22, %v88_v22 }
  0xd9   :  { %v76_v24 = vmin.f32 %v1140_v21, 1e+12  ;;  %1070 = vmatpush3.xpose.msk.msra.mxu0 %vm61_vm0, %v68_v20 }
  0xda   :  { %v98_v25 = vmul.f32 %v97_v23, %v90_v1  ;;  %1079 = vmatprep.subr.mxu0 %v1276_v6  ;;  %v410_v47 = vsel %vm61_vm0, %v409_v43, 0.0 }
  0xdb   :  { %v77_v26 = vmul.f32 %v90_v1, %v76_v24 }
  0xdc   :  { %1072 = vmatmul.mubr.msk.f32.vlgmr.msra.gmra.mrb[0].mxu0 %vm61_vm0, %v88_v22  ;;  %v1361_v27 = vmul.f32 %v98_v25, %v88_v22  ;;  %v416_v49 = vmul.f32 %v98_v25, %v98_v25 }
  0xdd   :  { %1075 = vmatpush3.xpose.msk.msra.mxu1 %vm61_vm0, %v77_v26  ;;  %1080 = vmatpush3.xpose.msk.msra.mxu0 %vm61_vm0, %v77_v26 }
  0xde   :  { %1081 = vmatprep.mubr.msk.f32.mxu0 %vm1277_vm1, %v1276_v6  ;;  %1084 = vmatprep.subr.mxu1 %v1276_v6  ;;  %v417_v50 = vsel %vm61_vm0, %v416_v49, 0.0 }
  0xdf   :  { %1089 = vmatprep.subr.mxu0 %v1276_v6 }
  0xe0   :  { %1077 = vmatmul.mubr.msk.f32.vlgmr.msra.gmra.mrb[0].mxu1 %vm61_vm0, %v98_v25  ;;  %1082 = vmatmul.mubr.msk.f32.vlgmr.msra.gmra.mrb[2].mxu0 %vm61_vm0, %v88_v22 }
  0xe1   :  { %1085 = vmatpush3.xpose.msk.msra.mxu1 %vm61_vm0, %v68_v20  ;;  %1090 = vmatpush3.xpose.msk.msra.mxu0 %vm61_vm0, %v478_v28 }
  0xe2   :  { %1086 = vmatprep.mubr.msk.f32.mxu1 %vm1277_vm1, %v1276_v6  ;;  %1091 = vmatprep.mubr.msk.f32.mxu0 %vm1277_vm1, %v1276_v6 }
  0xe3   :  { %1094 = vmatprep.subr.mxu1 %v1276_v6  ;;  %1099 = vmatprep.subr.mxu0 %v1276_v6 }
  0xe4   :  { %1087 = vmatmul.mubr.msk.f32.vlgmr.msra.gmra.mrb[2].mxu1 %vm61_vm0, %v98_v25  ;;  %1092 = vmatmul.mubr.msk.f32.vlgmr.msra.gmra.mrb[4].mxu0 %vm61_vm0, %v480_v29 }
  0xe5   :  { %1095 = vmatpush3.xpose.msk.msra.mxu1 %vm61_vm0, %v479_v30  ;;  %1096 = vmatprep.mubr.msk.f32.mxu1 %vm1277_vm1, %v1276_v6 }
  0xe6   :  { %1101 = vmatprep.mubr.msk.f32.mxu0 %vm1277_vm1, %v1276_v6  ;;  %1104 = vmatprep.subr.mxu1 %v1276_v6 }
  0xe8   :  { %1097 = vmatmul.mubr.msk.f32.vlgmr.msra.gmra.mrb[4].mxu1 %vm61_vm0, %v480_v29 }
  0xe9   :  { %1106 = vmatprep.mubr.msk.f32.mxu1 %vm1277_vm1, %v1276_v6 }
 0x1af   :  { %v171_v31 = vpop.f32.mrb[0].mxu0 }
 0x1b0   :  { %v1073_v32 = vpop.f32.mrb[1].mxu0  ;;  %v176_v57 = vmul.f32 %v1403_v53, %v171_v31 }
 0x1b2   :  { %v177_v60 = vmul.f32 1.442695, %v176_v57 }
 0x1b3   :  { %v251_v33 = vpop.f32.mrb[0].mxu1  ;;  %v324_v34 = vpop.f32.mrb[2].mxu0 }
 0x1b4   :  { %v1078_v35 = vpop.f32.mrb[1].mxu1  ;;  %v1083_v36 = vpop.f32.mrb[3].mxu0  ;;  %v328_v54 = vmul.f32 %v324_v34, %v1403_v53  ;;  %v255_v59 = vmul.f32 %v251_v33, %v1403_v53 }
 0x1b6   :  { %v329_v58 = vmul.f32 1.442695, %v328_v54  ;;  %v256_v63 = vmul.f32 1.442695, %v255_v59 }
 0x1b7   :  { %v397_v37 = vpop.f32.mrb[2].mxu1  ;;  %v553_v38 = vpop.f32.mrb[4].mxu0 }
 0x1b8   :  { %v630_v39 = vmul.f32 %v553_v38, %v553_v38  ;;  %v1088_v40 = vpop.f32.mrb[3].mxu1  ;;  %v1093_v41 = vpop.f32.mrb[5].mxu0  ;;  %v401_v61 = vmul.f32 %v397_v37, %v1403_v53 }
 0x1ba   :  { %v631_v42 = vsel %vm423_vm2, %v630_v39, 0.0  ;;  %v402_v1 = vmul.f32 1.442695, %v401_v61 }
 0x1bb   :  { %632 = vadd.xlane.f32.xlu0 %v631_v42  ;;  %v626_v44 = vpop.f32.mrb[4].mxu1 }
 0x1bc   :  { %v638_v45 = vmul.f32 %v626_v44, %v626_v44  ;;  %v1098_v46 = vpop.f32.mrb[5].mxu1 }
 0x1be   :  { %v639_v48 = vsel %vm423_vm2, %v638_v45, 0.0 }
 0x1bf   :  { %411 = vadd.xlane.f32.xlu0 %v410_v47  ;;  %640 = vadd.xlane.f32.xlu1 %v639_v48 }
 0x1c3   :  { %418 = vadd.xlane.f32.xlu1 %v417_v50 }
 0x248   :  { %v633_v51 = vpop.xlane.xlu0 %632 }
 0x249   :  { %v634_v52 = vmax.f32 %v633_v51, 1e-30 }
 0x24b   :  { %1141 = vrsqrt.f32 %v634_v52 }
 0x24c   :  { %v641_v55 = vpop.xlane.xlu1 %640  ;;  %v412_v46 = vpop.xlane.xlu0 %411 }
 0x24d   :  { %v642_v56 = vmax.f32 %v641_v55, 1e-30  ;;  %v413_v49 = vmul.f32 %v412_v46, %v1403_v53 }
 0x24f   :  { %1143 = vrsqrt.f32 %v642_v56  ;;  %v414_v54 = vmul.f32 1.442695, %v413_v49 }
 0x250   :  { %1145 = vpow2.f32 %v329_v58  ;;  %v419_v48 = vpop.xlane.xlu1 %418 }
 0x251   :  { %1147 = vpow2.f32 %v177_v60  ;;  %v420_v50 = vmul.f32 %v419_v48, %v1403_v53 }
 0x252   :  { %1149 = vpow2.f32 %v256_v63 }
 0x253   :  { %1151 = vpow2.f32 %v402_v1  ;;  %v421_v55 = vmul.f32 1.442695, %v420_v50 }
 0x255   :  { %v1142_v62 = vpop.eup %1141 }
 0x256   :  { %v636_v0 = vmin.f32 %v1142_v62, 1e+12 }
 0x258   :  { %v637_v2 = vmul.f32 %v636_v0, %v553_v38 }
 0x259   :  { %v1144_v3 = vpop.eup %1143 }
 0x25a   :  { %v644_v4 = vmin.f32 %v1144_v3, 1e+12  ;;  %1100 = vmatpush3.xpose.msk.msra.mxu0 %vm423_vm2, %v637_v2  ;;  %v951_v5 = vmul.f32 %v637_v2, %v637_v2  ;;  %v1146_v9 = vpop.eup %1145 }
 0x25b   :  { %1109 = vmatprep.subr.mxu0 %v1276_v6  ;;  %v427_v12 = vsel %vm423_vm2, %v1146_v9, 0.0  ;;  %v1148_v14 = vpop.eup %1147 }
 0x25c   :  { %v645_v7 = vmul.f32 %v644_v4, %v626_v44  ;;  %v952_v8 = vsel %vm423_vm2, %v951_v5, 0.0  ;;  %v1150_v15 = vpop.eup %1149  ;;  %v424_v16 = vsel %vm423_vm2, %v1148_v14, 0.0  ;;  %v405_v44 = vsel %vm61_vm0, %v1361_v27, 0.0 }
 0x25d   :  { %953 = vadd.xlane.f32.xlu0 %v952_v8  ;;  %1102 = vmatmul.mubr.msk.f32.vlgmr.msra.gmra.mrb[6].mxu0 %vm423_vm2, %v637_v2  ;;  %v1152_v18 = vpop.eup %1151  ;;  %v432_v19 = vsel %vm423_vm2, %v1150_v15, 0.0 }
 0x25e   :  { %1105 = vmatpush3.xpose.msk.msra.mxu1 %vm423_vm2, %v645_v7  ;;  %1110 = vmatpush3.xpose.msk.msra.mxu0 %vm423_vm2, %v645_v7  ;;  %v958_v10 = vmul.f32 %v645_v7, %v645_v7  ;;  %v944_v11 = vmul.f32 %v645_v7, %v637_v2  ;;  %v435_v20 = vsel %vm423_vm2, %v1152_v18, 0.0 }
 0x25f   :  { %1111 = vmatprep.mubr.msk.f32.mxu0 %vm1277_vm1, %v1276_v6  ;;  %1114 = vmatprep.subr.mxu1 %v1276_v6 }
 0x260   :  { %v959_v13 = vsel %vm423_vm2, %v958_v10, 0.0  ;;  %v945_v17 = vsel %vm423_vm2, %v944_v11, 0.0 }
 0x261   :  { %428 = vadd.xlane.f32.xlu0 %v427_v12  ;;  %960 = vadd.xlane.f32.xlu1 %v959_v13 }
 0x262   :  { %1107 = vmatmul.mubr.msk.f32.vlgmr.msra.gmra.mrb[6].mxu1 %vm423_vm2, %v645_v7  ;;  %1112 = vmatmul.mubr.msk.f32.vlgmr.msra.gmra.mrb[8].mxu0 %vm423_vm2, %v637_v2 }
 0x263   :  { %1115 = vmatpush3.xpose.msk.msra.mxu1 %vm423_vm2, %v637_v2  ;;  %1116 = vmatprep.mubr.msk.f32.mxu1 %vm1277_vm1, %v1276_v6 }
 0x265   :  { %425 = vadd.xlane.f32.xlu1 %v424_v16  ;;  %946 = vadd.xlane.f32.xlu0 %v945_v17 }
 0x266   :  { %1117 = vmatmul.mubr.msk.f32.vlgmr.msra.gmra.mrb[8].mxu1 %vm423_vm2, %v645_v7 }
 0x269   :  { %433 = vadd.xlane.f32.xlu1 %v432_v19  ;;  %436 = vadd.xlane.f32.xlu0 %v435_v20 }
 0x2ea   :  { %v954_v47 = vpop.xlane.xlu0 %953 }
 0x2eb   :  { %v955_v61 = vmul.f32 %v954_v47, %v1403_v53 }
 0x2ed   :  { %v956_v3 = vmul.f32 1.442695, %v955_v61 }
 0x2ee   :  { %v429_v51 = vpop.xlane.xlu0 %428  ;;  %v961_v52 = vpop.xlane.xlu1 %960 }
 0x2ef   :  { %v962_v4 = vmul.f32 %v961_v52, %v1403_v53 }
 0x2f1   :  { %v963_v7 = vmul.f32 1.442695, %v962_v4 }
 0x2f2   :  { %v947_v56 = vpop.xlane.xlu0 %946  ;;  %v426_v57 = vpop.xlane.xlu1 %425 }
 0x2f3   :  { %v430_v59 = vadd.f32 %v429_v51, %v426_v57  ;;  %v948_v0 = vmul.f32 %v947_v56, %v1403_v53 }
 0x2f5   :  { %v949_v5 = vmul.f32 1.442695, %v948_v0 }
 0x2f6   :  { %v437_v27 = vpop.xlane.xlu0 %436  ;;  %v434_v58 = vpop.xlane.xlu1 %433 }
 0x2f7   :  { %v438_v60 = vadd.f32 %v437_v27, %v434_v58 }
 0x330   :  { %v715_v21 = vpop.f32.mrb[6].mxu0 }
 0x331   :  { %v719_v22 = vmul.f32 %v715_v21, %v1403_v53  ;;  %v1103_v6 = vpop.f32.mrb[7].mxu0 }
 0x333   :  { %v720_v23 = vmul.f32 1.442695, %v719_v22 }
 0x335   :  { %1153 = vpow2.f32 %v720_v23  ;;  %v791_v24 = vpop.f32.mrb[6].mxu1  ;;  %v864_v25 = vpop.f32.mrb[8].mxu0 }
 0x336   :  { %v795_v26 = vmul.f32 %v791_v24, %v1403_v53  ;;  %v868_v28 = vmul.f32 %v864_v25, %v1403_v53  ;;  %v1108_v29 = vpop.f32.mrb[7].mxu1  ;;  %v1113_v30 = vpop.f32.mrb[9].mxu0 }
 0x338   :  { %v796_v31 = vmul.f32 1.442695, %v795_v26  ;;  %v869_v32 = vmul.f32 1.442695, %v868_v28 }
 0x339   :  { %v937_v33 = vpop.f32.mrb[8].mxu1 }
 0x33a   :  { %1155 = vpow2.f32 %v796_v31  ;;  %v941_v34 = vmul.f32 %v937_v33, %v1403_v53  ;;  %v1118_v35 = vpop.f32.mrb[9].mxu1 }
 0x33b   :  { %1157 = vpow2.f32 %v869_v32 }
 0x33c   :  { %v942_v36 = vmul.f32 1.442695, %v941_v34 }
 0x33e   :  { %1159 = vpow2.f32 %v942_v36 }
 0x33f   :  { %v1154_v37 = vpop.eup %1153  ;;  %1161 = vpow2.f32 %v414_v54 }
 0x340   :  { %v965_v38 = vsel %vm423_vm2, %v1154_v37, 0.0  ;;  %1163 = vpow2.f32 %v421_v55 }
 0x341   :  { %966 = vadd.xlane.f32.xlu1 %v965_v38 }
 0x344   :  { %v1156_v39 = vpop.eup %1155 }
 0x345   :  { %v1158_v40 = vpop.eup %1157  ;;  %v974_v41 = vsel %vm423_vm2, %v1156_v39, 0.0 }
 0x346   :  { %v968_v42 = vsel %vm423_vm2, %v1158_v40, 0.0  ;;  %975 = vadd.xlane.f32.xlu1 %v974_v41 }
 0x347   :  { %969 = vadd.xlane.f32.xlu0 %v968_v42 }
 0x348   :  { %v1160_v43 = vpop.eup %1159 }
 0x349   :  { %v977_v45 = vsel %vm423_vm2, %v1160_v43, 0.0  ;;  %v1162_v62 = vpop.eup %1161 }
 0x34a   :  { %406 = vadd.xlane.f32.xlu1 %v405_v44  ;;  %v1164_v63 = vpop.eup %1163  ;;  %v431_v1 = vsub.f32 %v430_v59, %v1162_v62 }
 0x34b   :  { %978 = vadd.xlane.f32.xlu0 %v977_v45  ;;  %v439_v2 = vsub.f32 %v438_v60, %v1164_v63 }
 0x34c   :  { %1165 = vlog2.f32 %v431_v1 }
 0x34d   :  { %1167 = vlog2.f32 %v439_v2 }
 0x34e   :  { %1169 = vpow2.f32 %v956_v3 }
 0x34f   :  { %1171 = vpow2.f32 %v949_v5 }
 0x350   :  { %1173 = vpow2.f32 %v963_v7 }
 0x356   :  { %v1166_v10 = vpop.eup %1165 }
 0x357   :  { %v1168_v12 = vpop.eup %1167  ;;  %v441_v21 = vmul.f32 0.6931472, %v1166_v10 }
 0x358   :  { %v1170_v14 = vpop.eup %1169  ;;  %v455_v20 = vmul.f32 0.6931472, %v1168_v12 }
 0x359   :  { %v1172_v17 = vpop.eup %1171 }
 0x35a   :  { %v1174_v23 = vpop.eup %1173 }
 0x3ce   :  { %v967_v8 = vpop.xlane.xlu1 %966 }
 0x3d3   :  { %v976_v9 = vpop.xlane.xlu1 %975 }
 0x3d4   :  { %v970_v11 = vpop.xlane.xlu0 %969 }
 0x3d5   :  { %v971_v13 = vadd.f32 %v970_v11, %v967_v8 }
 0x3d7   :  { %v972_v15 = vsub.f32 %v971_v13, %v1170_v14  ;;  %v407_v16 = vpop.xlane.xlu1 %406 }
 0x3d8   :  { %v408_v18 = vmul.f32 %v407_v16, %v1403_v53  ;;  %v979_v19 = vpop.xlane.xlu0 %978 }
 0x3d9   :  { %v973_v22 = vsub.f32 %v972_v15, %v1172_v17  ;;  %v980_v6 = vadd.f32 %v979_v19, %v976_v9 }
 0x3da   :  { %v456_v24 = vsub.f32 %v455_v20, %v408_v18  ;;  %v442_v25 = vsub.f32 %v441_v21, %v408_v18 }
 0x3db   :  { %1175 = vlog2.f32 %v973_v22  ;;  %v981_v26 = vsub.f32 %v980_v6, %v1174_v23 }
 0x3dc   :  { %v457_v28 = vsel %vm443_vm3, %v456_v24, 0.0  ;;  %v444_v29 = vsel %vm443_vm3, %v442_v25, 0.0 }
 0x3dd   :  { %v982_v30 = vsub.f32 %v981_v26, %v1172_v17  ;;  %458 = vadd.xlane.f32.xlu1 %v457_v28  ;;  %445 = vadd.xlane.f32.xlu0 %v444_v29 }
 0x3df   :  { %1177 = vlog2.f32 %v982_v30 }
 0x3e5   :  { %v1176_v53 = vpop.eup %1175 }
 0x3e6   :  { %v984_v31 = vmul.f32 0.6931472, %v1176_v53 }
 0x3e8   :  { %v985_v32 = vsub.f32 %v984_v31, %v948_v0 }
 0x3e9   :  { %v1178_v33 = vpop.eup %1177 }
 0x3ea   :  { %v986_v34 = vsel %vm443_vm3, %v985_v32, 0.0  ;;  %v997_v35 = vmul.f32 0.6931472, %v1178_v33 }
 0x3eb   :  { %987 = vadd.xlane.f32.xlu0 %v986_v34 }
 0x3ec   :  { %v998_v36 = vsub.f32 %v997_v35, %v948_v0 }
 0x3ee   :  { %v999_v37 = vsel %vm443_vm3, %v998_v36, 0.0 }
 0x3ef   :  { %1000 = vadd.xlane.f32.xlu1 %v999_v37 }
 0x46a   :  { %v459_v38 = vpop.xlane.xlu1 %458  ;;  %v446_v39 = vpop.xlane.xlu0 %445 }
 0x46b   :  { %v460_v40 = vrot.slane %v459_v38, 4  ;;  %v447_v41 = vrot.slane %v446_v39, 4 }
 0x46d   :  { %v461_v42 = vadd.f32 %v460_v40, %v459_v38  ;;  %v448_v43 = vadd.f32 %v447_v41, %v446_v39 }
 0x46f   :  { %v462_v44 = vrot.slane %v461_v42, 2  ;;  %v449_v45 = vrot.slane %v448_v43, 2 }
 0x471   :  { %v450_v46 = vadd.f32 %v449_v45, %v448_v43  ;;  %v463_v47 = vadd.f32 %v462_v44, %v461_v42 }
 0x473   :  { %v451_v48 = vrot.slane %v450_v46, 1  ;;  %v464_v49 = vrot.slane %v463_v47, 1 }
 0x475   :  { %v452_v50 = vadd.f32 %v451_v48, %v450_v46  ;;  %v465_v51 = vadd.f32 %v464_v49, %v463_v47 }
 0x477   :  { %1119 = vpush %v452_v50 }
 0x478   :  { %1121 = vpush %v465_v51  ;;  %v988_v52 = vpop.xlane.xlu0 %987 }
 0x479   :  { %v989_v54 = vrot.slane %v988_v52, 4 }
 0x47b   :  { %v990_v55 = vadd.f32 %v989_v54, %v988_v52 }
 0x47c   :  { %v1001_v56 = vpop.xlane.xlu1 %1000 }
 0x47d   :  { %v991_v57 = vrot.slane %v990_v55, 2  ;;  %v1002_v27 = vrot.slane %v1001_v56, 4 }
 0x47f   :  { %v992_v58 = vadd.f32 %v991_v57, %v990_v55  ;;  %v1003_v59 = vadd.f32 %v1002_v27, %v1001_v56 }
 0x481   :  { %v1004_v60 = vrot.slane %v1003_v59, 2  ;;  %v993_v61 = vrot.slane %v992_v58, 1 }
 0x483   :  { %v1005_v62 = vadd.f32 %v1004_v60, %v1003_v59  ;;  %v994_v63 = vadd.f32 %v993_v61, %v992_v58 }
 0x485   :  { %1123 = vpush %v994_v63  ;;  %v1006_v0 = vrot.slane %v1005_v62, 1 }
 0x487   :  { %v1007_v1 = vadd.f32 %v1006_v0, %v1005_v62 }
 0x489   :  { %1125 = vpush %v1007_v1 }
 0x4a8   :  { %s1120_s0 = spop %1119 }
 0x4a9   :  { %v467_v2 = vstv %s1120_s0  ;;  %s1122_s10 = spop %1121 }
 0x4aa   :  { %v468_v3 = vstv %s1122_s10 }
 0x4ab   :  { %v470_v4 = vsel %vm469_vm4, %v467_v2, %v468_v3 }
 0x4ac   :  { %v472_v5 = vsel %vm471_vm5, %v470_v4, 0.0 }
 0x4ad   :  { %473 = vst [vmem:[#allocation10] sm:$0xff] %v472_v5 }
 0x4b6   :  { %s1124_s11 = spop %1123 }
 0x4b7   :  { %v1009_v7 = vstv %s1124_s11 }
 0x4ba   :  { %s1126_s14 = spop %1125 }
 0x4bb   :  { %v1010_v8 = vstv %s1126_s14 }
 0x4bc   :  { %v1011_v9 = vsel %vm469_vm4, %v1009_v7, %v1010_v8 }
 0x4bd   :  { %1012 = vst [vmem:[#allocation10 + $0x2] sm:$0x3] %v1011_v9 }
 0x4be   :  { %1256 = shalt.err (!%p1253_p0)
}
 0x4bf   :  { %s1257_s18 = scalar_lea.hbm %s1468_s6, 128 }
 0x4c0   :  { %p1258_p1 = scmp.ne.s32.totalorder %s1468_s6, %s1257_s18  ;;  %p1261_p2 = scmp.lt.u32.totalorder %s1257_s18, %s1468_s6 }
 0x4c2   :  { %p1263_p3 = pnand %p1261_p2, %p1258_p1 }
 0x4c4   :  { %1266 = shalt.err (!%p1263_p3)
}
 0x4c5   :  { %1022 = dma.vmem_to_hbm [thread:$0]  %s1020_s13, 128, %s1468_s6, [#allocation6]  }
 0x4c6   :  { %1271 = dma.done.wait [#allocation6], 128  }
 0x4c7   :  { %1272 = vsyncadd [#allocation6], 4294967168 }
 0x4c8   :  { %1026 = vsyncpa [#allocation5], 1 }
 0x4c9   :  { %1027 = vsyncpa [#allocation8], 1 }
 0x4ca   :  { %1028 = vsyncpa [#allocation6], 1 }

</bundles_post_ra>
